<compile_context>
chip_gen: v6e
topology: v6e:2x2x1
jax: 0.10.0
libtpu: 0.0.40
codegen_flags: <defaults>
</compile_context>

<pallas_src>
import jax
import jax.numpy as jnp
from jax.experimental import pallas as pl
from jax.experimental.pallas import tpu as pltpu


_LANE = 1024   # lane (last) dim of the 2-D view: large multiple of 128
_TM = 256      # rows per block -> f32 block = 1 MiB (6 MiB double-buffered total)


def _bce_with_logits_kernel(x_ref, t_ref, o_ref):
    # Numerically-stable BCE-with-logits, identical to PyTorch:
    #   loss = max(x, 0) - x * t + log(1 + exp(-|x|))
    x = x_ref[...].astype(jnp.float32)
    t = t_ref[...].astype(jnp.float32)
    loss = jnp.maximum(x, 0.0) - x * t + jnp.log1p(jnp.exp(-jnp.abs(x)))
    o_ref[...] = loss.astype(o_ref.dtype)


def kd_loss(logit, logit_old):
    """KDLoss forward (BCEWithLogitsLoss, reduction='none'), NCHW in / NCHW out."""
    # TODO(synk): pos_weight and 'mean'/'sum' reductions are not implemented;
    # the reference forward's reshape is only well-defined for reduction='none'.
    N, C, H, W = logit.shape
    total = N * C * H * W

    # Flatten to a lane-dense 2-D slab (rows, _LANE); pad the tail so the last
    # dim is a multiple of 128 and row blocks tile the row dim evenly.
    rows = pl.cdiv(total, _LANE)
    if rows > _TM:
        tm = _TM
        rows = pl.cdiv(rows, tm) * tm        # pad rows up to a multiple of tm
    else:
        tm = rows                            # one row-block covers everything
    padded = rows * _LANE

    x1d = logit.reshape(-1)
    t1d = logit_old.reshape(-1)
    if padded != total:
        pad = padded - total
        x1d = jnp.pad(x1d, (0, pad))
        t1d = jnp.pad(t1d, (0, pad))
    x2d = x1d.reshape(rows, _LANE)
    t2d = t1d.reshape(rows, _LANE)

    block = pl.BlockSpec((tm, _LANE), lambda i: (i, 0))

    out2d = pl.pallas_call(
        _bce_with_logits_kernel,
        out_shape=jax.ShapeDtypeStruct((rows, _LANE), logit.dtype),
        grid_spec=pltpu.PrefetchScalarGridSpec(
            num_scalar_prefetch=0,
            grid=(rows // tm,),
            in_specs=[block, block],
            out_specs=block,
        ),
        compiler_params=pltpu.CompilerParams(
            dimension_semantics=("parallel",)),
        cost_estimate=pl.CostEstimate(
            flops=6 * total,
            transcendentals=2 * total,
            bytes_accessed=3 * total * logit.dtype.itemsize),
    )(x2d, t2d)

    return out2d.reshape(-1)[:total].reshape(N, C, H, W)


def _kd_loss_ref(logit, logit_old):
    """Faithful re-implementation of the PyTorch forward (reduction='none')."""
    N, C, H, W = logit.shape
    x = logit.transpose(0, 2, 3, 1).reshape(-1, C).astype(jnp.float32)
    t = logit_old.transpose(0, 2, 3, 1).reshape(-1, C).astype(jnp.float32)
    loss = jnp.maximum(x, 0.0) - x * t + jnp.log1p(jnp.exp(-jnp.abs(x)))
    return loss.reshape(N, H, W, C).transpose(0, 3, 1, 2).astype(logit.dtype)


if __name__ == "__main__":
    key = jax.random.PRNGKey(0)

    # Primary small check (module-consistent shape).
    k1, k2, k3, k4, k5, k6 = jax.random.split(key, 6)
    shapes = [
        (2, 4, 16, 16),    # small, exact tiling
        (2, 4, 33, 17),    # ragged -> exercises tail padding
        (4, 8, 96, 96),    # rows > _TM -> exercises the multi-block grid
    ]
    keys = [(k1, k2), (k3, k4), (k5, k6)]

    ok = True
    for (ka, kb), shp in zip(keys, shapes):
        logit = jax.random.normal(ka, shp, dtype=jnp.float32)
        logit_old = jax.random.normal(kb, shp, dtype=jnp.float32)
        out = jax.block_until_ready(kd_loss(logit, logit_old))
        ref = _kd_loss_ref(logit, logit_old)
        ok = ok and out.shape == shp and bool(
            jnp.allclose(out, ref, atol=1e-5, rtol=1e-5))

    assert ok
    print("KERNEL_OK")
</pallas_src>

<mosaic_0001>
module attributes {stable_mosaic.version = 11 : i64} {
  func.func @_bce_with_logits_kernel(%arg0: i32, %arg1: memref<2x1024xf32, #tpu.memory_space<vmem>>, %arg2: memref<2x1024xf32, #tpu.memory_space<vmem>>, %arg3: memref<2x1024xf32, #tpu.memory_space<vmem>>) attributes {dimension_semantics = [#tpu.dimension_semantics<parallel>], iteration_bounds = array<i64: 1>, scalar_prefetch = 0 : i64, scratch_operands = 0 : i64, tpu.core_type = #tpu.core_type<tc>, window_params = [{transform_indices = @transform_0, window_bounds = array<i64: 2, 1024>}, {transform_indices = @transform_1, window_bounds = array<i64: 2, 1024>}, {transform_indices = @transform_2, window_bounds = array<i64: 2, 1024>}]} {
    %c0 = arith.constant 0 : index
    %c0_0 = arith.constant 0 : index
    %0 = vector.load %arg1[%c0, %c0_0] : memref<2x1024xf32, #tpu.memory_space<vmem>>, vector<2x1024xf32>
    %c0_1 = arith.constant 0 : index
    %c0_2 = arith.constant 0 : index
    %1 = vector.load %arg2[%c0_1, %c0_2] : memref<2x1024xf32, #tpu.memory_space<vmem>>, vector<2x1024xf32>
    %cst = arith.constant 0.000000e+00 : f32
    %2 = vector.broadcast %cst : f32 to vector<2x1024xf32>
    %3 = arith.maximumf %0, %2 : vector<2x1024xf32>
    %4 = arith.mulf %0, %1 : vector<2x1024xf32>
    %5 = arith.subf %3, %4 : vector<2x1024xf32>
    %6 = math.absf %0 : vector<2x1024xf32>
    %cst_3 = arith.constant 0.000000e+00 : f32
    %7 = vector.broadcast %cst_3 : f32 to vector<2x1024xf32>
    %8 = arith.subf %7, %6 : vector<2x1024xf32>
    %9 = math.exp %8 : vector<2x1024xf32>
    %10 = math.log1p %9 : vector<2x1024xf32>
    %11 = arith.addf %5, %10 : vector<2x1024xf32>
    %c0_4 = arith.constant 0 : index
    %c0_5 = arith.constant 0 : index
    %12 = vector.load %arg3[%c0_4, %c0_5] : memref<2x1024xf32, #tpu.memory_space<vmem>>, vector<2x1024xf32>
    tpu.vector_store %arg3[%c0_4, %c0_5], %11 {strides = array<i32>} : memref<2x1024xf32, #tpu.memory_space<vmem>>, vector<2x1024xf32>,
    return
  }
  func.func @transform_0(%arg0: i32) -> (i32, i32) {
    %c0_i32 = arith.constant 0 : i32
    %c0_i32_0 = arith.constant 0 : i32
    return %arg0, %c0_i32 : i32, i32
  }
  func.func @transform_1(%arg0: i32) -> (i32, i32) {
    %c0_i32 = arith.constant 0 : i32
    %c0_i32_0 = arith.constant 0 : i32
    return %arg0, %c0_i32 : i32, i32
  }
  func.func @transform_2(%arg0: i32) -> (i32, i32) {
    %c0_i32 = arith.constant 0 : i32
    %c0_i32_0 = arith.constant 0 : i32
    return %arg0, %c0_i32 : i32, i32
  }
}

</mosaic_0001>

<bundles_post_ra>
// kernel: tpu_custom_call.1
= control target key start
LH: loop header
LB: loop body
LE: loop exit
PB: predicated region body
PF: predicated region fallthrough
CT: control target
= control target key end

     0   :  { %7 = vsyncpa [#allocation3], 0  ;;  %s196_s0 = inlined_call_operand.hbm [shape: f32[2,1024], index: 0, kind: input, shape index: {}]   ;;  %s197_s1 = inlined_call_operand.hbm [shape: f32[2,1024], index: 1, kind: input, shape index: {}]   ;;  %s198_s2 = inlined_call_operand.hbm [shape: f32[2,1024], index: 2, kind: output, shape index: {}]  }
   0x1   :  { %8 = vsyncpa [#allocation6], 0 }
   0x2   :  { %9 = vsyncpa [#allocation4], 0  ;;  %s169_s9 = smov [#allocation2]   ;;  %s170_s11 = smov [#allocation5]  }
   0x3   :  { %s16_s10 = sshll.u32 %s169_s9, 4  ;;  %s26_s12 = sshll.u32 %s170_s11, 4  ;;  %s17_s10 = int_to_ptr.vmem [resolvable:$true] %s16_s10  ;;  %s27_s12 = int_to_ptr.vmem [resolvable:$true] %s26_s12 }
   0x4   :  { %s111_s13 = scalar_lea.vmem %s17_s10, 256  ;;  %p116_p1 = scmp.lt.s32.totalorder %s17_s10, %s17_s10 }
   0x5   :  { %p112_p0 = scmp.ne.s32.totalorder %s17_s10, %s111_s13  ;;  %p117_p2 = scmp.lt.s32.totalorder %s111_s13, %s111_s13 }
   0x7   :  { %p118_p3 = por %p117_p2, %p116_p1 }
   0x9   :  { %p119_p4 = pnand %p118_p3, %p112_p0 }
   0xb   :  { %122 = shalt.err (!%p119_p4)
}
   0xc   :  { %19 = dma.hbm_to_vmem [thread:$0]  %s196_s0, 256, %s17_s10, [#allocation3]  }
   0xd   :  { %s131_s16 = scalar_lea.vmem %s27_s12, 256  ;;  %p136_p6 = scmp.lt.s32.totalorder %s27_s12, %s27_s12 }
   0xe   :  { %p132_p5 = scmp.ne.s32.totalorder %s27_s12, %s131_s16  ;;  %p137_p7 = scmp.lt.s32.totalorder %s131_s16, %s131_s16 }
  0x10   :  { %p138_p8 = por %p137_p7, %p136_p6 }
  0x12   :  { %p139_p9 = pnand %p138_p8, %p132_p5 }
  0x14   :  { %142 = shalt.err (!%p139_p9)
}
  0x15   :  { %29 = dma.hbm_to_vmem [thread:$0]  %s197_s1, 256, %s27_s12, [#allocation6]  }
  0x16   :  { %163 = dma.done.wait [#allocation3], 256  }
  0x17   :  { %164 = vsyncadd [#allocation3], 4294967040 }
  0x18   :  { %165 = dma.done.wait [#allocation6], 256  }
  0x19   :  { %166 = vsyncadd [#allocation6], 4294967040  ;;  %v36_v0 = vld [vmem:[#allocation2] sm:$0xff]  ;;  %v37_v1 = vld [vmem:[#allocation2 + $0x8] sm:$0xff]  ;;  %s171_s0 = smov [#allocation7]  }
  0x1a   :  { %v46_v2 = vand.u32 2147483647, %v36_v0  ;;  %v47_v3 = vand.u32 2147483647, %v37_v1  ;;  %v38_v14 = vld [vmem:[#allocation5] sm:$0xff]  ;;  %v39_v15 = vld [vmem:[#allocation5 + $0x8] sm:$0xff] }
  0x1b   :  { %v40_v17 = vmax.f32 %v36_v0, 0.0  ;;  %v42_v18 = vmul.f32 %v38_v14, %v36_v0  ;;  %v41_v21 = vmax.f32 %v37_v1, 0.0  ;;  %v43_v22 = vmul.f32 %v39_v15, %v37_v1  ;;  %s82_s1 = sshll.u32 %s171_s0, 4  ;;  %s83_s1 = int_to_ptr.vmem [resolvable:$true] %s82_s1 }
  0x1c   :  { %v48_v4 = vsub.f32 0.0, %v46_v2  ;;  %v49_v5 = vsub.f32 0.0, %v47_v3  ;;  %s143_s19 = scalar_lea.vmem %s83_s1, 256  ;;  %p148_p11 = scmp.lt.s32.totalorder %s83_s1, %s83_s1 }
  0x1d   :  { %v44_v26 = vsub.f32 %v40_v17, %v42_v18  ;;  %v45_v30 = vsub.f32 %v41_v21, %v43_v22  ;;  %p144_p10 = scmp.ne.s32.totalorder %s83_s1, %s143_s19  ;;  %p149_p12 = scmp.lt.s32.totalorder %s143_s19, %s143_s19 }
  0x1e   :  { %v50_v6 = vmul.f32 1.442695, %v48_v4  ;;  %v52_v7 = vmul.f32 1.442695, %v49_v5 }
  0x1f   :  { %p150_p13 = por %p149_p12, %p148_p11 }
  0x20   :  { %95 = vpow2.f32 %v50_v6 }
  0x21   :  { %97 = vpow2.f32 %v52_v7  ;;  %p151_p0 = pnand %p150_p13, %p144_p10 }
  0x2d   :  { %v96_v8 = vpop.eup %95 }
  0x2e   :  { %v98_v9 = vpop.eup %97  ;;  %v54_v10 = vadd.f32 1.0, %v96_v8  ;;  %v57_v12 = vmul.f32 -0.5, %v96_v8  ;;  %v60_v19 = vand.u32 2147483647, %v96_v8 }
  0x2f   :  { %v63_v11 = vadd.f32 1.0, %v98_v9  ;;  %v66_v13 = vmul.f32 -0.5, %v98_v9  ;;  %v69_v23 = vand.u32 2147483647, %v98_v9 }
  0x30   :  { %99 = vlog2.f32 %v54_v10  ;;  %v58_v16 = vadd.f32 1.0, %v57_v12  ;;  %vm61_vm0 = vcmp.lt.f32.partialorder %v60_v19, 0.0004427343 }
  0x31   :  { %101 = vlog2.f32 %v63_v11  ;;  %v67_v20 = vadd.f32 1.0, %v66_v13  ;;  %vm70_vm1 = vcmp.lt.f32.partialorder %v69_v23, 0.0004427343 }
  0x32   :  { %v59_v24 = vmul.f32 %v96_v8, %v58_v16 }
  0x33   :  { %v68_v27 = vmul.f32 %v98_v9, %v67_v20 }
  0x3d   :  { %v100_v25 = vpop.eup %99 }
  0x3e   :  { %v102_v28 = vpop.eup %101  ;;  %v56_v29 = vmul.f32 0.6931472, %v100_v25 }
  0x3f   :  { %v65_v31 = vmul.f32 0.6931472, %v102_v28 }
  0x40   :  { %v62_v32 = vsel %vm61_vm0, %v59_v24, %v56_v29 }
  0x41   :  { %v72_v33 = vadd.f32 %v62_v32, %v44_v26  ;;  %v71_v34 = vsel %vm70_vm1, %v68_v27, %v65_v31 }
  0x42   :  { %v73_v35 = vadd.f32 %v71_v34, %v45_v30 }
  0x43   :  { %74 = vst [vmem:[#allocation7] sm:$0xff] %v72_v33 }
  0x44   :  { %75 = vst [vmem:[#allocation7 + $0x8] sm:$0xff] %v73_v35 }
  0x45   :  { %154 = shalt.err (!%p151_p0)
}
  0x46   :  { %85 = dma.vmem_to_hbm [thread:$0]  %s83_s1, 256, %s198_s2, [#allocation4]  }
  0x47   :  { %167 = dma.done.wait [#allocation4], 256  }
  0x48   :  { %168 = vsyncadd [#allocation4], 4294967040 }
  0x49   :  { %89 = vsyncpa [#allocation3], 1 }
  0x4a   :  { %90 = vsyncpa [#allocation6], 1 }
  0x4b   :  { %91 = vsyncpa [#allocation4], 1 }

</bundles_post_ra>
